<compile_context>
chip_gen: v7x
topology: tpu7x:2x2x1
jax: 0.10.0
libtpu: 0.0.40
codegen_flags: <defaults>
</compile_context>

<pallas_src>
import functools

import jax
import jax.numpy as jnp
from jax.experimental import pallas as pl
from jax.experimental.pallas import tpu as pltpu

_SMOOTH = 1.0
_VMEM_LIMIT_BYTES = 48 * 1024 * 1024      # explicit; safe on v5e/v6e/v7x
_TARGET_TILE_BYTES = 4 * 1024 * 1024      # per-input D-tile target


def _round_up(x, m):
    return ((x + m - 1) // m) * m


def _soft_dice_partial_kernel(inp_ref, tgt_ref, inter_ref, denom_ref,
                              inter_acc, denom_acc, *,
                              d_true, td, kd, grid_d, needs_d_mask,
                              has_overrun):
    # All program_id reads stay at the top level of the kernel body (never
    # inside a pl.when closure) so every lowering path resolves them.
    c = pl.program_id(0)            # reduction-axis core split ("parallel")
    k = pl.program_id(2)            # D tile within this split ("arbitrary")
    gk = c * kd + k                 # global D-tile index (may overrun)

    @pl.when(k == 0)
    def _init():
        inter_acc[...] = jnp.zeros_like(inter_acc)
        denom_acc[...] = jnp.zeros_like(denom_acc)

    def _accumulate(mask_tail):
        x = inp_ref[...].astype(jnp.float32)
        t = tgt_ref[...].astype(jnp.float32)
        if mask_tail:
            # Zero the out-of-range tail columns of the final partial D tile
            # BEFORE any math so unspecified out-of-bounds data cannot
            # contaminate real rows.  (1, td) lane iota keeps it cheap.
            col = jax.lax.broadcasted_iota(jnp.int32, (1, td), 1)
            in_range = ((grid_d - 1) * td + col) < d_true
            x = jnp.where(in_range, x, 0.0)
            t = jnp.where(in_range, t, 0.0)
        inter_acc[...] += jnp.sum(x * t, axis=1, keepdims=True)
        denom_acc[...] += jnp.sum(x + t, axis=1, keepdims=True)

    if needs_d_mask:
        # Only the final D tile pays the mask; interior tiles stay a pure
        # cast + mul/add + reduce.  Overrun duplicate tiles (gk >= grid_d)
        # fall through both branches and are skipped.
        @pl.when(gk < grid_d - 1)
        def _interior():
            _accumulate(False)

        @pl.when(gk == grid_d - 1)
        def _tail():
            _accumulate(True)
    elif has_overrun:
        # The last core split re-reads one wrapped duplicate tile; skip it.
        @pl.when(gk < grid_d)
        def _valid():
            _accumulate(False)
    else:
        _accumulate(False)

    @pl.when(k == kd - 1)
    def _finalize():
        inter_ref[...] = inter_acc[...][None]     # (tn,1) -> (1,tn,1)
        denom_ref[...] = denom_acc[...][None]


def _choose_tiles(n, d, itemsize, block_n, block_d):
    # --- N tile ---
    if block_n is not None:
        tn = block_n
        assert tn == n or tn % 8 == 0, (
            "block_n must be a multiple of 8 or equal to the batch size")
    elif n < 8:
        tn = n
    elif n < 16:
        tn = 8
    else:
        # Ensure at least 2 N tiles so the "parallel" batch axis can feed
        # both TensorCores on v7x; cap at 64 rows per tile.
        tn = min(64, _round_up(pl.cdiv(n, 2), 8))
    grid_n = pl.cdiv(n, tn)

    # --- D tile ---
    if block_d is not None:
        td = block_d
        assert td == d or td % 128 == 0, (
            "block_d must be a multiple of 128 or equal to the flattened dim")
    else:
        td = _TARGET_TILE_BYTES // max(1, tn * itemsize)
        td = max(128, (td // 128) * 128)
        if grid_n == 1 and d > 2 * 128:
            # Small batch: guarantee >= 2 D tiles so the reduction-axis core
            # split has work for a second v7x TensorCore.
            td = min(td, _round_up(pl.cdiv(d, 2), 128))
        if d <= td:
            td = d
    return tn, td


def soft_dice_loss(inp, tgt, *, block_n=None, block_d=None):
    assert inp.shape == tgt.shape, "input and target must have the same shape"
    n = inp.shape[0]
    d = 1
    for s in inp.shape[1:]:
        d *= s

    # view(N, -1): free reshape, no pad, no dtype change (bf16 stays bf16).
    inp_flat = inp.reshape(n, d)
    tgt_flat = tgt.reshape(n, d)

    itemsize = max(inp.dtype.itemsize, tgt.dtype.itemsize)
    tn, td = _choose_tiles(n, d, itemsize, block_n, block_d)
    grid_n = pl.cdiv(n, tn)
    grid_d = pl.cdiv(d, td)
    needs_d_mask = (d % td) != 0

    # Reduction-axis core split: only when the batch axis alone cannot feed
    # both v7x TensorCores.  Runs serially (and harmlessly) on 1-TC chips.
    ncs = 2 if (grid_n == 1 and grid_d >= 2) else 1
    kd = pl.cdiv(grid_d, ncs)
    has_overrun = ncs * kd > grid_d

    if has_overrun:
        in_map = lambda c, i, k: (i, (c * kd + k) % grid_d)
    else:
        in_map = lambda c, i, k: (i, c * kd + k)
    out_map = lambda c, i, k: (c, i, 0)

    kernel = functools.partial(
        _soft_dice_partial_kernel,
        d_true=d, td=td, kd=kd, grid_d=grid_d,
        needs_d_mask=needs_d_mask, has_overrun=has_overrun)

    n_pad = grid_n * tn
    inter_p, denom_p = pl.pallas_call(
        kernel,
        out_shape=(jax.ShapeDtypeStruct((ncs, n_pad, 1), jnp.float32),
                   jax.ShapeDtypeStruct((ncs, n_pad, 1), jnp.float32)),
        grid=(ncs, grid_n, kd),
        in_specs=[pl.BlockSpec((tn, td), in_map),
                  pl.BlockSpec((tn, td), in_map)],
        out_specs=(pl.BlockSpec((1, tn, 1), out_map),
                   pl.BlockSpec((1, tn, 1), out_map)),
        scratch_shapes=[pltpu.VMEM((tn, 1), jnp.float32),   # sum(x*t) per row
                        pltpu.VMEM((tn, 1), jnp.float32)],  # sum(x+t) per row
        compiler_params=pltpu.CompilerParams(
            dimension_semantics=("parallel", "parallel", "arbitrary"),
            vmem_limit_bytes=_VMEM_LIMIT_BYTES,
        ),
    )(inp_flat, tgt_flat)

    # Combine the tiny per-(split, row) partials outside the kernel.  Padded
    # rows (if any) are simply sliced off — the kernel's reductions are all
    # per-row, so garbage in padded rows never mixes with real rows.
    inter = jnp.sum(inter_p[:, :n, 0], axis=0)
    denom = jnp.sum(denom_p[:, :n, 0], axis=0)
    dice = 2.0 * (inter + _SMOOTH) / (denom + _SMOOTH)
    return 1.0 - jnp.sum(dice) / n


def _soft_dice_loss_ref(inp, tgt):
    # Pure-JAX reference mirroring the PyTorch forward exactly.
    n = tgt.shape[0]
    x = inp.reshape(n, -1).astype(jnp.float32)
    t = tgt.reshape(n, -1).astype(jnp.float32)
    inter = jnp.sum(x * t, axis=1)
    denom = jnp.sum(x, axis=1) + jnp.sum(t, axis=1)
    dice = 2.0 * (inter + _SMOOTH) / (denom + _SMOOTH)
    return 1.0 - jnp.sum(dice) / n


if __name__ == "__main__":
    # SoftDiceLoss has no learnable parameters; nothing to initialize.
    key = jax.random.PRNGKey(0)
    k_in, k_tgt = jax.random.split(key)

    # Main shape: NCHW segmentation-style inputs, batch=2, ch=4, 16x16.
    x = jax.nn.sigmoid(jax.random.normal(k_in, (2, 4, 16, 16), jnp.float32))
    y = jax.random.bernoulli(k_tgt, p=0.5, shape=(2, 4, 16, 16)).astype(
        jnp.float32)

    loss = jax.block_until_ready(soft_dice_loss(x, y))
    ref = _soft_dice_loss_ref(x, y)
    assert jnp.allclose(loss, ref, rtol=1e-5, atol=1e-5), (loss, ref)

    # Extra correctness checks for the tiled / masked / bf16 / split paths.
    k1, k2, k3, k4, k5, k6 = jax.random.split(key, 6)

    # (a) bf16 input, D = 972 (not a multiple of 128): masked partial tail
    #     D tile + small-batch core split (grid_d=4 -> 2 tiles per split).
    xa = jax.nn.sigmoid(
        jax.random.normal(k1, (2, 3, 18, 18), jnp.float32)).astype(jnp.bfloat16)
    ya = jax.random.bernoulli(k2, p=0.5, shape=(2, 3, 18, 18)).astype(
        jnp.float32)
    la = jax.block_until_ready(soft_dice_loss(xa, ya, block_d=256))
    ra = _soft_dice_loss_ref(xa, ya)
    assert jnp.allclose(la, ra, rtol=1e-5, atol=1e-5), (la, ra)

    # (b) Multiple N tiles on the "parallel" batch axis with a padded tail
    #     N block (N=12, tile 8) plus multiple D tiles.
    xb = jax.nn.sigmoid(jax.random.normal(k3, (12, 4, 8, 8), jnp.float32))
    yb = jax.random.bernoulli(k4, p=0.5, shape=(12, 4, 8, 8)).astype(
        jnp.float32)
    lb = jax.block_until_ready(soft_dice_loss(xb, yb, block_n=8, block_d=128))
    rb = _soft_dice_loss_ref(xb, yb)
    assert jnp.allclose(lb, rb, rtol=1e-5, atol=1e-5), (lb, rb)

    # (c) Odd number of D tiles with the core split (grid_d=3, ncs=2):
    #     exercises the wrapped duplicate-tile skip path.
    xc = jax.nn.sigmoid(jax.random.normal(k5, (2, 6, 8, 8), jnp.float32))
    yc = jax.random.bernoulli(k6, p=0.5, shape=(2, 6, 8, 8)).astype(
        jnp.float32)
    lc = jax.block_until_ready(soft_dice_loss(xc, yc, block_d=128))
    rc = _soft_dice_loss_ref(xc, yc)
    assert jnp.allclose(lc, rc, rtol=1e-5, atol=1e-5), (lc, rc)

    print("KERNEL_OK")
</pallas_src>

<mosaic_0001>
module attributes {stable_mosaic.version = 11 : i64} {
  func.func @_soft_dice_partial_kernel(%arg0: i32, %arg1: i32, %arg2: i32, %arg3: memref<2x512xf32, #tpu.memory_space<vmem>>, %arg4: memref<2x512xf32, #tpu.memory_space<vmem>>, %arg5: memref<1x2x1xf32, #tpu.memory_space<vmem>>, %arg6: memref<1x2x1xf32, #tpu.memory_space<vmem>>, %arg7: memref<2x1xf32, #tpu.memory_space<vmem>>, %arg8: memref<2x1xf32, #tpu.memory_space<vmem>>) attributes {dimension_semantics = [#tpu.dimension_semantics<parallel>, #tpu.dimension_semantics<parallel>, #tpu.dimension_semantics<arbitrary>], iteration_bounds = array<i64: 2, 1, 1>, scalar_prefetch = 0 : i64, scratch_operands = 2 : i64, tpu.core_type = #tpu.core_type<tc>, window_params = [{transform_indices = @transform_0, window_bounds = array<i64: 2, 512>}, {transform_indices = @transform_1, window_bounds = array<i64: 2, 512>}, {transform_indices = @transform_2, window_bounds = array<i64: 1, 2, 1>}, {transform_indices = @transform_3, window_bounds = array<i64: 1, 2, 1>}]} {
    %c0_i32 = arith.constant 0 : i32
    %0 = arith.cmpi eq, %arg2, %c0_i32 : i32
    %1 = arith.extui %0 : i1 to i32
    %c0_i32_0 = arith.constant 0 : i32
    %2 = arith.cmpi ne, %1, %c0_i32_0 : i32
    scf.if %2 {
      %cst_15 = arith.constant 0.000000e+00 : f32
      %20 = vector.broadcast %cst_15 : f32 to vector<2x1xf32>
      %c0_16 = arith.constant 0 : index
      %c0_17 = arith.constant 0 : index
      %21 = vector.load %arg7[%c0_16, %c0_17] : memref<2x1xf32, #tpu.memory_space<vmem>>, vector<2x1xf32>
      tpu.vector_store %arg7[%c0_16, %c0_17], %20 {strides = array<i32>} : memref<2x1xf32, #tpu.memory_space<vmem>>, vector<2x1xf32>,
      %cst_18 = arith.constant 0.000000e+00 : f32
      %22 = vector.broadcast %cst_18 : f32 to vector<2x1xf32>
      %c0_19 = arith.constant 0 : index
      %c0_20 = arith.constant 0 : index
      %23 = vector.load %arg8[%c0_19, %c0_20] : memref<2x1xf32, #tpu.memory_space<vmem>>, vector<2x1xf32>
      tpu.vector_store %arg8[%c0_19, %c0_20], %22 {strides = array<i32>} : memref<2x1xf32, #tpu.memory_space<vmem>>, vector<2x1xf32>,
    } else {
    }
    %c0 = arith.constant 0 : index
    %c0_1 = arith.constant 0 : index
    %3 = vector.load %arg3[%c0, %c0_1] : memref<2x512xf32, #tpu.memory_space<vmem>>, vector<2x512xf32>
    %c0_2 = arith.constant 0 : index
    %c0_3 = arith.constant 0 : index
    %4 = vector.load %arg4[%c0_2, %c0_3] : memref<2x512xf32, #tpu.memory_space<vmem>>, vector<2x512xf32>
    %c0_4 = arith.constant 0 : index
    %c0_5 = arith.constant 0 : index
    %5 = vector.load %arg7[%c0_4, %c0_5] : memref<2x1xf32, #tpu.memory_space<vmem>>, vector<2x1xf32>
    %6 = arith.mulf %3, %4 : vector<2x512xf32>
    %cst = arith.constant dense<0.000000e+00> : vector<2xf32>
    %7 = vector.multi_reduction <add>, %6, %cst [1] : vector<2x512xf32> to vector<2xf32>
    %8 = vector.shape_cast %7 : vector<2xf32> to vector<2x1xf32>
    %9 = arith.addf %5, %8 : vector<2x1xf32>
    %c0_6 = arith.constant 0 : index
    %c0_7 = arith.constant 0 : index
    %10 = vector.load %arg7[%c0_6, %c0_7] : memref<2x1xf32, #tpu.memory_space<vmem>>, vector<2x1xf32>
    tpu.vector_store %arg7[%c0_6, %c0_7], %9 {strides = array<i32>} : memref<2x1xf32, #tpu.memory_space<vmem>>, vector<2x1xf32>,
    %c0_8 = arith.constant 0 : index
    %c0_9 = arith.constant 0 : index
    %11 = vector.load %arg8[%c0_8, %c0_9] : memref<2x1xf32, #tpu.memory_space<vmem>>, vector<2x1xf32>
    %12 = arith.addf %3, %4 : vector<2x512xf32>
    %cst_10 = arith.constant dense<0.000000e+00> : vector<2xf32>
    %13 = vector.multi_reduction <add>, %12, %cst_10 [1] : vector<2x512xf32> to vector<2xf32>
    %14 = vector.shape_cast %13 : vector<2xf32> to vector<2x1xf32>
    %15 = arith.addf %11, %14 : vector<2x1xf32>
    %c0_11 = arith.constant 0 : index
    %c0_12 = arith.constant 0 : index
    %16 = vector.load %arg8[%c0_11, %c0_12] : memref<2x1xf32, #tpu.memory_space<vmem>>, vector<2x1xf32>
    tpu.vector_store %arg8[%c0_11, %c0_12], %15 {strides = array<i32>} : memref<2x1xf32, #tpu.memory_space<vmem>>, vector<2x1xf32>,
    %c0_i32_13 = arith.constant 0 : i32
    %17 = arith.cmpi eq, %arg2, %c0_i32_13 : i32
    %18 = arith.extui %17 : i1 to i32
    %c0_i32_14 = arith.constant 0 : i32
    %19 = arith.cmpi ne, %18, %c0_i32_14 : i32
    scf.if %19 {
      %c0_15 = arith.constant 0 : index
      %c0_16 = arith.constant 0 : index
      %20 = vector.load %arg7[%c0_15, %c0_16] : memref<2x1xf32, #tpu.memory_space<vmem>>, vector<2x1xf32>
      %21 = vector.shape_cast %20 : vector<2x1xf32> to vector<1x2x1xf32>
      %c0_17 = arith.constant 0 : index
      %c0_18 = arith.constant 0 : index
      %c0_19 = arith.constant 0 : index
      %22 = vector.load %arg5[%c0_17, %c0_18, %c0_19] : memref<1x2x1xf32, #tpu.memory_space<vmem>>, vector<1x2x1xf32>
      tpu.vector_store %arg5[%c0_17, %c0_18, %c0_19], %21 {strides = array<i32>} : memref<1x2x1xf32, #tpu.memory_space<vmem>>, vector<1x2x1xf32>,
      %c0_20 = arith.constant 0 : index
      %c0_21 = arith.constant 0 : index
      %23 = vector.load %arg8[%c0_20, %c0_21] : memref<2x1xf32, #tpu.memory_space<vmem>>, vector<2x1xf32>
      %24 = vector.shape_cast %23 : vector<2x1xf32> to vector<1x2x1xf32>
      %c0_22 = arith.constant 0 : index
      %c0_23 = arith.constant 0 : index
      %c0_24 = arith.constant 0 : index
      %25 = vector.load %arg6[%c0_22, %c0_23, %c0_24] : memref<1x2x1xf32, #tpu.memory_space<vmem>>, vector<1x2x1xf32>
      tpu.vector_store %arg6[%c0_22, %c0_23, %c0_24], %24 {strides = array<i32>} : memref<1x2x1xf32, #tpu.memory_space<vmem>>, vector<1x2x1xf32>,
    } else {
    }
    return
  }
  func.func @transform_0(%arg0: i32, %arg1: i32, %arg2: i32) -> (i32, i32) {
    %c1_i32 = arith.constant 1 : i32
    %0 = arith.muli %arg0, %c1_i32 : i32
    %1 = arith.addi %0, %arg2 : i32
    %c0_i32 = arith.constant 0 : i32
    return %arg1, %1 : i32, i32
  }
  func.func @transform_1(%arg0: i32, %arg1: i32, %arg2: i32) -> (i32, i32) {
    %c1_i32 = arith.constant 1 : i32
    %0 = arith.muli %arg0, %c1_i32 : i32
    %1 = arith.addi %0, %arg2 : i32
    %c0_i32 = arith.constant 0 : i32
    return %arg1, %1 : i32, i32
  }
  func.func @transform_2(%arg0: i32, %arg1: i32, %arg2: i32) -> (i32, i32, i32) {
    %c0_i32 = arith.constant 0 : i32
    %c0_i32_0 = arith.constant 0 : i32
    return %arg0, %arg1, %c0_i32 : i32, i32, i32
  }
  func.func @transform_3(%arg0: i32, %arg1: i32, %arg2: i32) -> (i32, i32, i32) {
    %c0_i32 = arith.constant 0 : i32
    %c0_i32_0 = arith.constant 0 : i32
    return %arg0, %arg1, %c0_i32 : i32, i32, i32
  }
}

</mosaic_0001>

<bundles_post_ra>
// kernel: tpu_custom_call.1
= control target key start
LH: loop header
LB: loop body
LE: loop exit
PB: predicated region body
PF: predicated region fallthrough
CT: control target
= control target key end

     0   :  { %9 = vsyncpa [#allocation5], 0  ;;  %s945_s0 = inlined_call_operand.hbm [shape: f32[2,1024], index: 0, kind: input, shape index: {}]   ;;  %s946_s1 = inlined_call_operand.hbm [shape: f32[2,1024], index: 1, kind: input, shape index: {}]   ;;  %s947_s2 = inlined_call_operand.vmem [shape: f32[2,2,1], index: 2, kind: output, shape index: {0}]   ;;  %s948_s3 = inlined_call_operand.vmem [shape: f32[2,2,1], index: 3, kind: output, shape index: {1}]  }
   0x1   :  { %11 = vsyncpa [#allocation5 + $0x1], 0 }
   0x2   :  { %12 = vsyncpa [#allocation7], 0 }
   0x3   :  { %14 = vsyncpa [#allocation7 + $0x1], 0  ;;  %s756_s12 = smov 0   ;;  %s758_s13 = smov 0  }
   0x4   :  { %s760_s14 = smov 0   ;;  %s762_s15 = smov 0  }
   0x5   :  { %s764_s16 = smov 0   ;;  %s766_s17 = smov 0  }
   0x6 LB: > { %s535_s18 = sadd.s32 4294967295, %s730_s17   ;;  %s39_s19 = sadd.s32 1, %s726_s16  ;;  %s730_s17 = sphi %s766_s17, %s20_s17   ;;  %s726_s16 = sphi %s764_s16, %s962_s16   ;;  %s722_s15 = sphi %s762_s15, %s961_s15   ;;  %s718_s14 = sphi %s760_s14, %s960_s14   ;;  %s714_s13 = sphi %s758_s13, %s959_s13   ;;  %s710_s12 = sphi %s756_s12, %s958_s12  }
   0x7   : > { %p41_p0 = scmp.ge.s32.totalorder %s39_s19, 2  ;;  %s50_s20 = sadd.s32 1, %s718_s14 }
   0x8   : > { %p57_p1 = scmp.ne.s32.totalorder %s718_s14, %s714_s13  ;;  %p58_p2 = scmp.eq.s32.totalorder %s730_s17, 0 }
   0x9   : > { %s964_s19 = smov (%p41_p0, %s39_s19), 0  ;;  %p63_p4 = scmp.ne.s32.totalorder %s714_s13, %s710_s12 }
   0xa   : > { %p792_p3 = por %p58_p2, %p57_p1  ;;  %s46_s22 = ssub.s32 %s726_s16, %s964_s19 }
   0xb   : > { %p64_p5 = scmp.eq.s32.totalorder %s535_s18, 0  ;;  %p48_p6 = scmp.eq.s32.totalorder %s46_s22, 0 }
   0xc   : > { %p565_p8 = scmp.lt.s32.totalorder %s730_s17, 2  ;;  %s808_s25 = sand.u32 1, %s718_s14  }
   0xd   : > { %p799_p7 = por %p64_p5, %p63_p4  ;;  %s552_s26 = sshll.u32 %s726_s16, 7 }
   0xe   : > { %s805_s24 = scalar_select %p48_p6, %s718_s14, %s50_s20  }
   0xf   : > { %s951_s23 = scalar_select %p799_p7, 1, 0 }
  0x10   : > { %s539_s27 = sshll.u32 %s808_s25, 3  ;;  %s817_s30 = scalar_lea.hbm %s945_s0, %s552_s26 }
  0x11   : > { %s177_s4 = scalar_lea.vmem [#allocation4], %s539_s27  ;;  %p823_p9 = pnand %p565_p8, %p792_p3 }
  0x12   : > { %s188_s5 = sshll.u32 %s177_s4, 4  ;;  %s174_s7 = scalar_lea.sflag [#allocation5], %s808_s25  ;;  %s827_s5 = int_to_ptr.vmem [resolvable:$true] %s188_s5 }
  0x13   : > { %s616_s8 = scalar_lea.hbm %s817_s30, 128  ;;  %p618_p13 = pneg %p823_p9 }
  0x14   : > { %p617_p12 = scmp.ne.s32.totalorder %s817_s30, %s616_s8  ;;  %s621_s11 = scalar_lea.hbm %s945_s0, 256 }
  0x15   : > { %p622_p2 = scmp.lt.u32.totalorder %s817_s30, %s945_s0  ;;  %p623_p3 = scmp.lt.u32.totalorder %s621_s11, %s616_s8 }
  0x16   : > { %p619_p0 = pnand %p618_p13, %p617_p12  ;;  %p625_p5 = scmp.lt.u32.totalorder %s616_s8, %s817_s30 }
  0x17   : > { %p624_p4 = por %p623_p3, %p622_p2 }
  0x18   : > { %p620_p1 = pneg %p619_p0 }
  0x19   : > { %p626_p6 = por %p625_p5, %p624_p4 }
  0x1b   : > { %p627_p8 = pnand %p626_p6, %p620_p1 }
  0x1d   : > { %630 = shalt.err (!%p627_p8)
}
  0x1e   : > { %s631_s20 = scalar_lea.vmem %s827_s5, 128  ;;  %s732_s21 = smov [#allocation4]  }
  0x1f   : > { %p632_p12 = scmp.ne.s32.totalorder %s827_s5, %s631_s20  ;;  %s636_s22 = sshll.u32 %s732_s21, 4  ;;  %s637_s22 = int_to_ptr.vmem [resolvable:$false] %s636_s22 }
  0x20   : > { %s638_s28 = scalar_lea.vmem %s637_s22, 256  ;;  %p639_p11 = scmp.lt.s32.totalorder %s827_s5, %s637_s22 }
  0x21   : > { %p634_p0 = pnand %p632_p12, %p618_p13  ;;  %p640_p2 = scmp.lt.s32.totalorder %s638_s28, %s631_s20 }
  0x23   : > { %p635_p10 = pneg %p634_p0  ;;  %p641_p3 = por %p640_p2, %p639_p11 }
  0x25   : > { %p642_p4 = pnand %p641_p3, %p635_p10 }
  0x27   : > { %645 = shalt.err (!%p642_p4)
}
  0x28   : > { %561 = dma.hbm_to_vmem [thread:$0]  (!%p823_p9), %s817_s30, 128, %s827_s5, %s174_s7  }
  0x29   : > { %p953_p1 = scmp.lt.s32.totalorder %s730_s17, 3  ;;  %p954_p5 = scmp.ge.s32.totalorder %s730_s17, 1 }
  0x2a   : > { %s870_s9 = scalar_lea.hbm %s946_s1, %s552_s26  ;;  %s199_s10 = scalar_lea.vmem [#allocation6], %s539_s27 }
  0x2b   : > { %p861_p6 = pnand %p954_p5, %p953_p1  ;;  %s210_s11 = sshll.u32 %s199_s10, 4  ;;  %s211_s11 = int_to_ptr.vmem [resolvable:$true] %s210_s11 }
  0x2c   : > { %s196_s30 = scalar_lea.sflag [#allocation7], %s808_s25  ;;  %s646_s5 = scalar_lea.hbm %s870_s9, 128 }
  0x2d   : > { %s955_s29 = scalar_select %p861_p6, 1, 0 }
  0x2e   : > { %p647_p10 = scmp.ne.s32.totalorder %s870_s9, %s646_s5  ;;  %s651_s26 = scalar_lea.hbm %s946_s1, 256 }
  0x2f   : > { %p652_p12 = scmp.lt.u32.totalorder %s870_s9, %s946_s1  ;;  %p653_p0 = scmp.lt.u32.totalorder %s651_s26, %s646_s5 }
  0x30   : > { %p649_p11 = pnand %p647_p10, %p618_p13  ;;  %p655_p3 = scmp.lt.u32.totalorder %s646_s5, %s870_s9 }
  0x31   : > { %p654_p2 = por %p653_p0, %p652_p12 }
  0x32   : > { %p650_p8 = pneg %p649_p11 }
  0x33   : > { %p656_p4 = por %p655_p3, %p654_p2 }
  0x35   : > { %p657_p1 = pnand %p656_p4, %p650_p8 }
  0x37   : > { %660 = shalt.err (!%p657_p1)
}
  0x38   : > { %s661_s25 = scalar_lea.vmem %s211_s11, 128  ;;  %s733_s27 = smov [#allocation6]  }
  0x39   : > { %p662_p5 = scmp.ne.s32.totalorder %s211_s11, %s661_s25  ;;  %s666_s21 = sshll.u32 %s733_s27, 4  ;;  %s667_s21 = int_to_ptr.vmem [resolvable:$false] %s666_s21 }
  0x3a   : > { %s668_s22 = scalar_lea.vmem %s667_s21, 256  ;;  %p669_p7 = scmp.lt.s32.totalorder %s211_s11, %s667_s21 }
  0x3b   : > { %p664_p10 = pnand %p662_p5, %p618_p13  ;;  %p670_p6 = scmp.lt.s32.totalorder %s668_s22, %s661_s25 }
  0x3d   : > { %p665_p11 = pneg %p664_p10  ;;  %p671_p0 = por %p670_p6, %p669_p7 }
  0x3f   : > { %p672_p12 = pnand %p671_p0, %p665_p11 }
  0x41   : > { %675 = shalt.err (!%p672_p12)
}
  0x42   : > { %564 = dma.hbm_to_vmem [thread:$0]  (!%p823_p9), %s870_s9, 128, %s211_s11, %s196_s30  }
  0x43   : > { %p956_p8 = scmp.ne.s32.totalorder %s955_s29, 0 }
  0x44   : > { %s221_s28 = sand.u32 (!%p956_p8), 1, %s714_s13   ;;  %p957_p13 = scmp.ne.s32.totalorder (!%p956_p8), %s951_s23, 0 }
  0x45   : > { %219 = sbr.rel (%p956_p8) target bundleno = 254 (0xfe), region = 28  ;;  %s546_s4 = sshll.u32 (!%p956_p8), %s221_s28, 3 }
  0x46   : > { %s222_s8 = scalar_lea.sflag (!%p956_p8), [#allocation5], %s221_s28  ;;  %s225_s10 = scalar_lea.vmem (!%p956_p8), [#allocation4], %s546_s4 }
  0x4c   : > { %701 = dma.done.wait (%p957_p13), %s222_s8, 128  }
  0x4d   : > { %703 = vsyncadd (%p957_p13), %s222_s8, 4294967168  ;;  %s231_s5 = scalar_lea.sflag [#allocation7], %s221_s28  ;;  %s234_s7 = scalar_lea.vmem [#allocation6], %s546_s4 }
  0x4e   : > { %705 = dma.done.wait (%p957_p13), %s231_s5, 128  }
  0x4f   : > { %707 = vsyncadd (%p957_p13), %s231_s5, 4294967168  ;;  %v305_v0 = vlaneseq  ;;  %vm293_vm0 = vcmask 1024   ;;  %v734_v1 = vmov 1983009808   ;;  %v735_v4 = vmov 0.0   ;;  %v296_v7 = vld [vmem:[%s225_s10] sm:$0xff] }
  0x50   : > { %v303_v2 = vunpack.c.l.s4 %v734_v1  ;;  %294 = vst.msk [vmem:[#allocation2] sm:$0x3] %vm293_vm0, %v735_v4  ;;  %295 = vst.msk [vmem:[#allocation3] sm:$0x3] %vm293_vm0, %v735_v4  ;;  %v297_v8 = vld [vmem:[%s234_s7] sm:$0xff]  ;;  %vm322_vm1 = vcmask 1041408  }
  0x51   : > { %v306_v3 = vshrl.u32 %v305_v0, 7  ;;  %v299_v9 = vmul.f32 %v297_v8, %v296_v7  ;;  %v336_v10 = vadd.f32 %v297_v8, %v296_v7  ;;  %p275_p7 = scmp.lt.s32.totalorder %s722_s15, 1 }
  0x52   : > { %v304_v5 = vunpack.c.0.s8 %v303_v2 }
  0x53   : > { %v301_v11 = vcombine.high %v299_v9, %v299_v9  ;;  %v338_v13 = vcombine.high %v336_v10, %v336_v10  ;;  %s966_s15 = smov (!%p275_p7, %s722_s15), 1 }
  0x54   : > { %v307_v6 = vsub.s32 %v304_v5, %v306_v3  ;;  %s548_s23 = sshll.u32 %s966_s15, 1 }
  0x55   : > { %s281_s9 = scalar_lea.vmem %s947_s2, %s548_s23  ;;  %s288_s12 = scalar_lea.vmem %s948_s3, %s548_s23 }
  0x56   : > { %v308_v12 = vrot.slane %v299_v9, %v307_v6  ;;  %v345_v14 = vrot.slane %v336_v10, %v307_v6  ;;  %v315_v15 = vrot.slane %v301_v11, %v307_v6  ;;  %v352_v18 = vrot.slane %v338_v13, %v307_v6 }
  0x57   : > { %v298_v35 = vld [vmem:[#allocation2] sm:$0x3]  ;;  %v335_v38 = vld [vmem:[#allocation3] sm:$0x3] }
  0x58   : > { %v316_v16 = vcombine.high %v308_v12, %v308_v12  ;;  %v323_v17 = vsel %vm322_vm1, %v308_v12, 0.0  ;;  %v353_v19 = vcombine.high %v345_v14, %v345_v14  ;;  %v359_v20 = vsel %vm322_vm1, %v345_v14, 0.0 }
  0x59   : > { %v317_v21 = vcombine.high %v315_v15, %v315_v15  ;;  %v326_v23 = vsel %vm322_vm1, %v315_v15, 0.0  ;;  %v354_v24 = vcombine.high %v352_v18, %v352_v18  ;;  %v362_v27 = vsel %vm322_vm1, %v352_v18, 0.0 }
  0x5a   : > { %v324_v22 = vsel %vm322_vm1, %v316_v16, 0.0  ;;  %v360_v26 = vsel %vm322_vm1, %v353_v19, 0.0 }
  0x5b   : > { %v325_v25 = vadd.f32 %v324_v22, %v323_v17  ;;  %v328_v28 = vsel %vm322_vm1, %v317_v21, 0.0  ;;  %v361_v29 = vadd.f32 %v360_v26, %v359_v20  ;;  %v364_v32 = vsel %vm322_vm1, %v354_v24, 0.0 }
  0x5d   : > { %v327_v30 = vadd.f32 %v326_v23, %v325_v25  ;;  %v363_v31 = vadd.f32 %v362_v27, %v361_v29 }
  0x5f   : > { %v329_v33 = vadd.f32 %v328_v28, %v327_v30  ;;  %v365_v34 = vadd.f32 %v364_v32, %v363_v31 }
  0x61   : > { %330 = vadd.xlane.f32.xlu0 %v329_v33 }
  0x65   : > { %366 = vadd.xlane.f32.xlu0 %v365_v34 }
  0xee   : > { %v331_v36 = vpop.xlane.xlu0 %330 }
  0xef   : > { %v332_v37 = vadd.f32 %v331_v36, %v298_v35 }
  0xf1   : > { %334 = vst.msk [vmem:[#allocation2] sm:$0x3] %vm293_vm0, %v332_v37 }
  0xf2   : > { %v367_v39 = vpop.xlane.xlu0 %366 }
  0xf3   : > { %v368_v40 = vadd.f32 %v367_v39, %v335_v38 }
  0xf5   : > { %369 = vst.msk [vmem:[#allocation3] sm:$0x3] %vm293_vm0, %v368_v40 }
  0xf8   : > { %v373_v41 = vld [vmem:[#allocation2] sm:$0x3] }
  0xf9   : > { %374 = vst.msk [vmem:[%s281_s9] sm:$0x3] %vm293_vm0, %v373_v41 }
  0xfc   : > { %v375_v42 = vld [vmem:[#allocation3] sm:$0x3] }
  0xfd   : > { %376 = vst.msk [vmem:[%s288_s12] sm:$0x3] %vm293_vm0, %v375_v42 }
  0xfe PF: > { %s20_s17 = sadd.s32 1, %s730_s17   ;;  %s958_s12 = smov %s714_s13 }
  0xff   : > { %p17_p9 = scmp.ge.s32.totalorder %s20_s17, 4   ;;  %s959_s13 = smov %s718_s14 }
 0x100   : > { %s960_s14 = smov %s805_s24  ;;  %s961_s15 = smov %s726_s16 }
 0x101   : > { %s962_s16 = smov %s964_s19  ;;  %19 = sbr.rel (!%p17_p9) target bundleno = 6 (0x6), region = 101 }
 0x108   :  { %422 = vsyncpa [#allocation5], 1 }
 0x109   :  { %424 = vsyncpa [#allocation5 + $0x1], 1 }
 0x10a   :  { %425 = vsyncpa [#allocation7], 1 }
 0x10b   :  { %427 = vsyncpa [#allocation7 + $0x1], 1 }

</bundles_post_ra>
